<compile_context>
chip_gen: v7x
topology: tpu7x:2x2x1
jax: 0.10.0
libtpu: 0.0.40
codegen_flags: <defaults>
</compile_context>

<pallas_src>
import math

import jax
import jax.numpy as jnp
from jax.experimental import pallas as pl
from jax.experimental.pallas import tpu as pltpu

NUM_ANCHORS = 3   # not defined in the source snippet; chosen for the demo
C = 1             # number of classes; not defined in the source snippet

BN_EPS = 1e-5
BN_SCALE = 1.0 / math.sqrt(1.0 + BN_EPS)   # gamma=1, beta=0, mean=0, var=1


# ----------------------------------------------------------------------------
# helpers
# ----------------------------------------------------------------------------
def autopad(k, p=None):
    if p is None:
        p = k // 2 if isinstance(k, int) else [x // 2 for x in k]
    return p


def _round_up(x, m):
    return (x + m - 1) // m * m


def _pick_lane_tile(m, max_tile=2048):
    """Largest lane tile that is a multiple of 128 and divides m (else full m)."""
    if m % 128 != 0:
        return m
    t = min(max_tile, m)
    t -= t % 128
    while m % t != 0:
        t -= 128
    return t


# ----------------------------------------------------------------------------
# Pallas kernel: fused 1x1 conv (+folded BN) [+ second 1x1 branch] [+ residual]
#                [+ SiLU]
#   y = W @ x (+ W2 @ x2) + b (+ r);  out = act ? y*sigmoid(y) : y
# Refs are 2-D tiles: W:(Co,Ci) resident, x:(Ci,T) lane tile, out:(Co,T).
# ----------------------------------------------------------------------------
def _make_pw_kernel(act, has_second, has_residual):
    def kernel(*refs):
        i = 0
        w_ref = refs[i]; i += 1
        b_ref = refs[i]; i += 1
        x_ref = refs[i]; i += 1
        y = jnp.dot(w_ref[...], x_ref[...], preferred_element_type=jnp.float32)
        if has_second:
            w2_ref = refs[i]; i += 1
            x2_ref = refs[i]; i += 1
            y = y + jnp.dot(w2_ref[...], x2_ref[...],
                            preferred_element_type=jnp.float32)
        y = y + b_ref[...]                      # (Co,1) broadcasts over lanes
        if has_residual:
            r_ref = refs[i]; i += 1
            y = y + r_ref[...].astype(jnp.float32)
        if act:
            y = y * jax.nn.sigmoid(y)           # SiLU (EUP + VPU)
        o_ref = refs[-1]
        o_ref[...] = y.astype(o_ref.dtype)
    return kernel


def fused_pointwise(x, w, b, *, act, w2=None, x2=None, b2=None, residual=None,
                    max_lane_tile=2048):
    """Fused 1x1 conv(+BN) [+ second 1x1 branch] [+ residual add] [+ SiLU].

    out[n,:,h,w] = act( w @ x[n,:,h,w] (+ w2 @ x2[n,:,h,w]) + (b (+ b2))
                        (+ residual[n,:,h,w]) )
    x/x2/residual: (N, C*, H, W);  w/w2: (C_out, C_in*);  b/b2: (C_out,)
    """
    N, C_in, H, W = x.shape
    C_out = w.shape[0]
    HW = H * W
    dtype = x.dtype

    beff = b if b2 is None else b + b2

    # Pad C_out up to a sublane multiple (8) so output stores are unmasked
    # (heads have C_out=18); slice the padding off afterwards.
    C_out_p = _round_up(C_out, 8)
    if C_out_p != C_out:
        pad = C_out_p - C_out
        w = jnp.pad(w, ((0, pad), (0, 0)))
        beff = jnp.pad(beff, ((0, pad),))
        if w2 is not None:
            w2 = jnp.pad(w2, ((0, pad), (0, 0)))
        if residual is not None:
            residual = jnp.pad(residual, ((0, 0), (0, pad), (0, 0), (0, 0)))

    b2d = beff.reshape(C_out_p, 1)
    has_second = w2 is not None
    has_res = residual is not None
    kernel = _make_pw_kernel(act, has_second, has_res)

    if HW % 128 == 0:
        # Lane-dense per-batch tiling; grid is fully parallel.
        t = _pick_lane_tile(HW, max_lane_tile)
        if N == 1 and HW // t < 2 and HW >= 256:
            # keep >=2 parallel grid steps so both v7x TensorCores are used
            t = _pick_lane_tile(HW, t // 2)
        grid = (N, HW // t)

        in_specs = [
            pl.BlockSpec((C_out_p, w.shape[1]), lambda n, s: (0, 0)),
            pl.BlockSpec((C_out_p, 1), lambda n, s: (0, 0)),
            pl.BlockSpec((None, C_in, t), lambda n, s: (n, 0, s)),
        ]
        args = [w, b2d, x.reshape(N, C_in, HW)]
        if has_second:
            c_in2 = x2.shape[1]
            in_specs += [
                pl.BlockSpec((C_out_p, c_in2), lambda n, s: (0, 0)),
                pl.BlockSpec((None, c_in2, t), lambda n, s: (n, 0, s)),
            ]
            args += [w2, x2.reshape(N, c_in2, HW)]
        if has_res:
            in_specs.append(pl.BlockSpec((None, C_out_p, t),
                                         lambda n, s: (n, 0, s)))
            args.append(residual.reshape(N, C_out_p, HW))

        out = pl.pallas_call(
            kernel,
            out_shape=jax.ShapeDtypeStruct((N, C_out_p, HW), dtype),
            grid=grid,
            in_specs=in_specs,
            out_specs=pl.BlockSpec((None, C_out_p, t), lambda n, s: (n, 0, s)),
            compiler_params=pltpu.CompilerParams(
                dimension_semantics=("parallel", "parallel")),
        )(*args)
        out = out.reshape(N, C_out_p, H, W)
    else:
        # Small deep-layer maps (HW < 128): flatten batch into the lane axis so
        # stores are as lane-dense as the data allows (8x8 @ N=2 -> 128 lanes).
        M = N * HW
        t = _pick_lane_tile(M, max_lane_tile)
        grid = (M // t,)

        def to_cm(a):
            n, c = a.shape[0], a.shape[1]
            return jnp.transpose(a.reshape(n, c, HW), (1, 0, 2)).reshape(c, n * HW)

        in_specs = [
            pl.BlockSpec((C_out_p, w.shape[1]), lambda s: (0, 0)),
            pl.BlockSpec((C_out_p, 1), lambda s: (0, 0)),
            pl.BlockSpec((C_in, t), lambda s: (0, s)),
        ]
        args = [w, b2d, to_cm(x)]
        if has_second:
            c_in2 = x2.shape[1]
            in_specs += [
                pl.BlockSpec((C_out_p, c_in2), lambda s: (0, 0)),
                pl.BlockSpec((c_in2, t), lambda s: (0, s)),
            ]
            args += [w2, to_cm(x2)]
        if has_res:
            in_specs.append(pl.BlockSpec((C_out_p, t), lambda s: (0, s)))
            args.append(to_cm(residual))

        out = pl.pallas_call(
            kernel,
            out_shape=jax.ShapeDtypeStruct((C_out_p, M), dtype),
            grid=grid,
            in_specs=in_specs,
            out_specs=pl.BlockSpec((C_out_p, t), lambda s: (0, s)),
            compiler_params=pltpu.CompilerParams(
                dimension_semantics=("parallel",)),
        )(*args)
        out = jnp.transpose(out.reshape(C_out_p, N, HW),
                            (1, 0, 2)).reshape(N, C_out_p, H, W)

    if C_out_p != C_out:
        out = out[:, :C_out]
    return out


# ----------------------------------------------------------------------------
# plain-JAX glue (no clean Pallas win for these at this size)
# ----------------------------------------------------------------------------
def conv2d_lax(x, w, b, *, stride, padding, groups):
    # TODO(synk): spatial 5x5 / 3x3 convolutions are left to XLA; an NHWC model
    # layout (or a Pallas depthwise-5x5 kernel built from pltpu.roll shifts)
    # would avoid the layout transposes XLA inserts around NCHW convs.
    y = jax.lax.conv_general_dilated(
        x, w,
        window_strides=(stride, stride),
        padding=[(padding, padding), (padding, padding)],
        dimension_numbers=("NCHW", "OIHW", "NCHW"),
        feature_group_count=groups,
    )
    return y + b.reshape(1, -1, 1, 1)


def maxpool(x, k):
    # MaxPool2d(kernel_size=k, stride=k) -- pure reshape/reduce layout work.
    N, Cc, H, W = x.shape
    return x.reshape(N, Cc, H // k, k, W // k, k).max(axis=(3, 5))


def upsample_nearest2(x):
    # TODO(synk): only used on the tiny 18-channel half-res head tensor now;
    # nearest 2x upsample is pure layout work, left to XLA.
    return jnp.repeat(jnp.repeat(x, 2, axis=2), 2, axis=3)


# ----------------------------------------------------------------------------
# parameter construction (kaiming conv init, zero bias, inference-mode BN fold)
# ----------------------------------------------------------------------------
def init_conv(key, c_out, c_in_per_group, k):
    fan_in = c_in_per_group * k * k
    std = math.sqrt(2.0 / fan_in)
    w = std * jax.random.normal(key, (c_out, c_in_per_group, k, k), dtype=jnp.float32)
    b = jnp.zeros((c_out,), jnp.float32)
    return w, b


def fold_bn(w, b):
    # TODO(synk): BatchNorm uses inference-mode running stats (mean=0, var=1,
    # gamma=1, beta=0 as initialized) folded into the conv; training-mode batch
    # statistics / trained BN parameters would need a per-channel scale/shift.
    return w * BN_SCALE, b * BN_SCALE


def make_conv_module(key, c1, c2, k=1, s=1, p=None, g=1, act=True):
    pad = autopad(k, p)
    w, b = fold_bn(*init_conv(key, c2, c1 // g, k))
    return dict(k=k, s=s, p=pad, g=g, act=act, w=w, b=b)


def conv_module_forward(m, x):
    if m["k"] == 1 and m["s"] == 1 and m["g"] == 1:
        return fused_pointwise(x, m["w"][:, :, 0, 0], m["b"], act=m["act"])
    y = conv2d_lax(x, m["w"], m["b"], stride=m["s"], padding=m["p"], groups=m["g"])
    return jax.nn.silu(y) if m["act"] else y


def make_blaze_block(key, c_in, c_out, c_mid=None, stride=1):
    c_mid = c_mid or c_in
    k1, k2, k3 = jax.random.split(key, 3)
    dw_w, dw_b = fold_bn(*init_conv(k1, c_mid, 1, 5))          # depthwise 5x5
    pw_w, pw_b = fold_bn(*init_conv(k2, c_out, c_mid, 1))      # 1x1
    params = dict(stride=stride, c_in=c_in,
                  dw_w=dw_w, dw_b=dw_b,
                  pw_w=pw_w[:, :, 0, 0], pw_b=pw_b)
    if stride > 1:
        sc_w, sc_b = fold_bn(*init_conv(k3, c_out, c_in, 1))
        params["sc_w"] = sc_w[:, :, 0, 0]
        params["sc_b"] = sc_b
    return params


def blaze_block_forward(p, x):
    stride = p["stride"]
    y = conv2d_lax(x, p["dw_w"], p["dw_b"], stride=stride, padding=2, groups=p["c_in"])
    if stride > 1:
        # single fused kernel: SiLU(W_pw @ y + W_sc @ maxpool(x) + b_pw + b_sc)
        pooled = maxpool(x, stride)
        return fused_pointwise(y, p["pw_w"], p["pw_b"], act=True,
                               w2=p["sc_w"], x2=pooled, b2=p["sc_b"])
    # 1x1 conv + BN fused with residual add + SiLU in a single Pallas kernel.
    return fused_pointwise(y, p["pw_w"], p["pw_b"], act=True, residual=x)


def make_double_blaze_block(key, c_in, c_out, c_mid=None, stride=1):
    c_mid = c_mid or c_in
    k1, k2, k3, k4, k5 = jax.random.split(key, 5)
    dw_w, dw_b = fold_bn(*init_conv(k1, c_in, 1, 5))            # depthwise 5x5
    pwa_w, pwa_b = fold_bn(*init_conv(k2, c_mid, c_in, 1))      # 1x1 (+SiLU)
    c5_w, c5_b = fold_bn(*init_conv(k3, c_mid, c_mid, 5))       # full 5x5
    pwb_w, pwb_b = fold_bn(*init_conv(k4, c_out, c_mid, 1))     # 1x1
    params = dict(stride=stride, c_in=c_in,
                  dw_w=dw_w, dw_b=dw_b,
                  pwa_w=pwa_w[:, :, 0, 0], pwa_b=pwa_b,
                  c5_w=c5_w, c5_b=c5_b,
                  pwb_w=pwb_w[:, :, 0, 0], pwb_b=pwb_b)
    if stride > 1:
        sc_w, sc_b = fold_bn(*init_conv(k5, c_out, c_in, 1))
        params["sc_w"] = sc_w[:, :, 0, 0]
        params["sc_b"] = sc_b
    return params


def double_blaze_block_forward(p, x):
    stride = p["stride"]
    y = conv2d_lax(x, p["dw_w"], p["dw_b"], stride=stride, padding=2, groups=p["c_in"])
    y = fused_pointwise(y, p["pwa_w"], p["pwa_b"], act=True)     # 1x1+BN+SiLU fused
    y = conv2d_lax(y, p["c5_w"], p["c5_b"], stride=1, padding=2, groups=1)
    if stride > 1:
        pooled = maxpool(x, stride)
        return fused_pointwise(y, p["pwb_w"], p["pwb_b"], act=True,
                               w2=p["sc_w"], x2=pooled, b2=p["sc_b"])
    return fused_pointwise(y, p["pwb_w"], p["pwb_b"], act=True, residual=x)


# ----------------------------------------------------------------------------
# BlazeFace model
# ----------------------------------------------------------------------------
class BlazeFace:
    def __init__(self, key, channels=24):
        keys = iter(jax.random.split(key, 32))
        ch = channels
        self.backboneA = [
            ("conv", make_conv_module(next(keys), 3, ch, k=3, s=2, p=1)),
            ("blaze", make_blaze_block(next(keys), ch, ch, ch)),
            ("blaze", make_blaze_block(next(keys), ch, ch, ch)),
            ("blaze", make_blaze_block(next(keys), ch, ch * 2, ch * 2, stride=2)),
            ("blaze", make_blaze_block(next(keys), ch * 2, ch * 2, ch * 2)),
            ("blaze", make_blaze_block(next(keys), ch * 2, ch * 2, ch * 2)),
            ("dblaze", make_double_blaze_block(next(keys), ch * 2, ch * 4, ch, stride=2)),
            ("dblaze", make_double_blaze_block(next(keys), ch * 4, ch * 4, ch)),
            ("dblaze", make_double_blaze_block(next(keys), ch * 4, ch * 4, ch)),
            ("dblaze", make_double_blaze_block(next(keys), ch * 4, ch * 4, ch, stride=2)),
            ("dblaze", make_double_blaze_block(next(keys), ch * 4, ch * 4, ch)),
            ("dblaze", make_double_blaze_block(next(keys), ch * 4, ch * 4, ch)),
        ]
        self.backboneB = [
            ("dblaze", make_double_blaze_block(next(keys), ch * 4, ch * 4, ch, stride=2)),
            ("dblaze", make_double_blaze_block(next(keys), ch * 4, ch * 4, ch)),
            ("dblaze", make_double_blaze_block(next(keys), ch * 4, ch * 4, ch)),
        ]
        no = NUM_ANCHORS * (C + 4 + 1)
        self.headL = make_conv_module(next(keys), ch * 4, no, k=1, s=1)
        self.headM2 = make_conv_module(next(keys), 96 + 96, no, k=1, s=1)

    @staticmethod
    def _run(blocks, x):
        for kind, p in blocks:
            if kind == "conv":
                x = conv_module_forward(p, x)
            elif kind == "blaze":
                x = blaze_block_forward(p, x)
            else:
                x = double_blaze_block_forward(p, x)
        return x

    def __call__(self, x):
        xA = self._run(self.backboneA, x)
        xB = self._run(self.backboneB, xA)
        oL = conv_module_forward(self.headL, xB)

        # Fused Upsample(2x, nearest) + cat(dim=1) + headM2 (1x1 conv+BN+SiLU):
        #   headM2(cat([xA, up2(xB)])) == SiLU(W_a @ xA + up2(W_b @ xB) + b)
        # (a 1x1 conv commutes with nearest upsampling), so neither the 96-ch
        # upsampled tensor nor the 192-ch concat ever touches HBM.
        w_m = self.headM2["w"][:, :, 0, 0]
        b_m = self.headM2["b"]
        split = xA.shape[1]
        tB = fused_pointwise(xB, w_m[:, split:], jnp.zeros_like(b_m), act=False)
        oM = fused_pointwise(xA, w_m[:, :split], b_m, act=True,
                             residual=upsample_nearest2(tB))

        preds = []
        for o in (oL, oM):
            b_, c_, h_, w_ = o.shape
            o = o.reshape(b_, NUM_ANCHORS, C + 4 + 1, h_, w_)
            o = jnp.moveaxis(o, 2, -1)
            preds.append(o)
        return preds


# ----------------------------------------------------------------------------
# demo / smoke test
# ----------------------------------------------------------------------------
if __name__ == "__main__":
    key = jax.random.PRNGKey(0)
    k_model, k_x = jax.random.split(key)

    model = BlazeFace(k_model, channels=24)
    x = jax.random.normal(k_x, (2, 3, 64, 64), dtype=jnp.float32)

    preds = jax.block_until_ready(model(x))

    no_last = C + 4 + 1
    assert preds[0].shape == (2, NUM_ANCHORS, 2, 2, no_last), preds[0].shape
    assert preds[1].shape == (2, NUM_ANCHORS, 4, 4, no_last), preds[1].shape
    assert all(bool(jnp.all(jnp.isfinite(p))) for p in preds)

    # --- sanity 1: plain fused 1x1 conv (lane-dense path, HW multiple of 128)
    xt = jax.random.normal(jax.random.PRNGKey(3), (2, 24, 16, 16), jnp.float32)
    wt = 0.1 * jax.random.normal(jax.random.PRNGKey(4), (16, 24), jnp.float32)
    bt = jnp.linspace(-1.0, 1.0, 16, dtype=jnp.float32)
    got = fused_pointwise(xt, wt, bt, act=True)
    ref = jax.nn.silu(
        jnp.einsum("oc,nchw->nohw", wt, xt, precision="highest")
        + bt.reshape(1, -1, 1, 1))
    assert bool(jnp.allclose(got, ref, rtol=1e-3, atol=1e-3))

    # --- sanity 2: dual-dot (fused shortcut) + C_out padding + small-map path
    yt = jax.random.normal(jax.random.PRNGKey(5), (2, 24, 4, 4), jnp.float32)
    pt = jax.random.normal(jax.random.PRNGKey(6), (2, 48, 4, 4), jnp.float32)
    w1 = 0.1 * jax.random.normal(jax.random.PRNGKey(7), (18, 24), jnp.float32)
    w2 = 0.1 * jax.random.normal(jax.random.PRNGKey(8), (18, 48), jnp.float32)
    b1 = jnp.linspace(-0.5, 0.5, 18, dtype=jnp.float32)
    b2 = jnp.linspace(0.5, -0.5, 18, dtype=jnp.float32)
    got = fused_pointwise(yt, w1, b1, act=True, w2=w2, x2=pt, b2=b2)
    ref = jax.nn.silu(
        jnp.einsum("oc,nchw->nohw", w1, yt, precision="highest")
        + jnp.einsum("oc,nchw->nohw", w2, pt, precision="highest")
        + (b1 + b2).reshape(1, -1, 1, 1))
    assert bool(jnp.allclose(got, ref, rtol=1e-3, atol=1e-3))

    # --- sanity 3: residual-add path (small-map layout)
    rt = jax.random.normal(jax.random.PRNGKey(9), (2, 18, 4, 4), jnp.float32)
    got = fused_pointwise(yt, w1, b1, act=True, residual=rt)
    ref = jax.nn.silu(
        jnp.einsum("oc,nchw->nohw", w1, yt, precision="highest")
        + b1.reshape(1, -1, 1, 1) + rt)
    assert bool(jnp.allclose(got, ref, rtol=1e-3, atol=1e-3))

    # --- sanity 4: fused upsample+concat+head vs explicit reference
    xA_t = jax.random.normal(jax.random.PRNGKey(10), (2, 16, 4, 4), jnp.float32)
    xB_t = jax.random.normal(jax.random.PRNGKey(11), (2, 16, 2, 2), jnp.float32)
    wh = 0.1 * jax.random.normal(jax.random.PRNGKey(12), (10, 32), jnp.float32)
    bh = jnp.linspace(-0.2, 0.2, 10, dtype=jnp.float32)
    tB_t = fused_pointwise(xB_t, wh[:, 16:], jnp.zeros_like(bh), act=False)
    got = fused_pointwise(xA_t, wh[:, :16], bh, act=True,
                          residual=upsample_nearest2(tB_t))
    cat = jnp.concatenate([xA_t, upsample_nearest2(xB_t)], axis=1)
    ref = jax.nn.silu(
        jnp.einsum("oc,nchw->nohw", wh, cat, precision="highest")
        + bh.reshape(1, -1, 1, 1))
    assert bool(jnp.allclose(got, ref, rtol=1e-3, atol=1e-3))

    print("KERNEL_OK")
</pallas_src>

<mosaic_0001>
module attributes {stable_mosaic.version = 11 : i64} {
  func.func @kernel(%arg0: i32, %arg1: i32, %arg2: memref<24x24xf32, #tpu.memory_space<vmem>>, %arg3: memref<24x1xf32, #tpu.memory_space<vmem>>, %arg4: memref<1x24x1024xf32, #tpu.memory_space<vmem>>, %arg5: memref<1x24x1024xf32, #tpu.memory_space<vmem>>, %arg6: memref<1x24x1024xf32, #tpu.memory_space<vmem>>) attributes {dimension_semantics = [#tpu.dimension_semantics<parallel>, #tpu.dimension_semantics<parallel>], iteration_bounds = array<i64: 2, 1>, scalar_prefetch = 0 : i64, scratch_operands = 0 : i64, tpu.core_type = #tpu.core_type<tc>, window_params = [{pipeline_mode = #tpu.pipeline_mode<synchronous>, transform_indices = @transform_0, window_bounds = array<i64: 24, 24>}, {pipeline_mode = #tpu.pipeline_mode<synchronous>, transform_indices = @transform_1, window_bounds = array<i64: 24, 1>}, {transform_indices = @transform_2, window_bounds = array<i64: 1, 24, 1024>}, {transform_indices = @transform_3, window_bounds = array<i64: 1, 24, 1024>}, {transform_indices = @transform_4, window_bounds = array<i64: 1, 24, 1024>}]} {
    %c0 = arith.constant 0 : index
    %c0_0 = arith.constant 0 : index
    %0 = vector.load %arg2[%c0, %c0_0] : memref<24x24xf32, #tpu.memory_space<vmem>>, vector<24x24xf32>
    %c0_1 = arith.constant 0 : index
    %c0_2 = arith.constant 0 : index
    %c0_3 = arith.constant 0 : index
    %1 = vector.load %arg4[%c0_1, %c0_2, %c0_3] : memref<1x24x1024xf32, #tpu.memory_space<vmem>>, vector<1x24x1024xf32>
    %2 = vector.shape_cast %1 : vector<1x24x1024xf32> to vector<24x1024xf32>
    %cst = arith.constant dense<0.000000e+00> : vector<24x1024xf32>
    %3 = tpu.matmul %0, %2, %cst {dimension_numbers = #tpu.dot_dimension_numbers<[1], [0], [0], [1], [0, 0, 1, 1], [], []>} : vector<24x24xf32>, vector<24x1024xf32>, vector<24x1024xf32> -> vector<24x1024xf32>
    %c0_4 = arith.constant 0 : index
    %c0_5 = arith.constant 0 : index
    %4 = vector.load %arg3[%c0_4, %c0_5] : memref<24x1xf32, #tpu.memory_space<vmem>>, vector<24x1xf32>
    %5 = vector.broadcast %4 : vector<24x1xf32> to vector<24x1024xf32>
    %6 = arith.addf %3, %5 : vector<24x1024xf32>
    %c0_6 = arith.constant 0 : index
    %c0_7 = arith.constant 0 : index
    %c0_8 = arith.constant 0 : index
    %7 = vector.load %arg5[%c0_6, %c0_7, %c0_8] : memref<1x24x1024xf32, #tpu.memory_space<vmem>>, vector<1x24x1024xf32>
    %8 = vector.shape_cast %7 : vector<1x24x1024xf32> to vector<24x1024xf32>
    %9 = arith.addf %6, %8 : vector<24x1024xf32>
    %10 = arith.negf %9 : vector<24x1024xf32>
    %11 = math.exp %10 : vector<24x1024xf32>
    %cst_9 = arith.constant 1.000000e+00 : f32
    %12 = vector.broadcast %cst_9 : f32 to vector<24x1024xf32>
    %13 = arith.addf %12, %11 : vector<24x1024xf32>
    %14 = arith.divf %12, %13 : vector<24x1024xf32>
    %15 = arith.mulf %9, %14 : vector<24x1024xf32>
    %c0_10 = arith.constant 0 : index
    %c0_11 = arith.constant 0 : index
    %c0_12 = arith.constant 0 : index
    %16 = vector.load %arg6[%c0_10, %c0_11, %c0_12] : memref<1x24x1024xf32, #tpu.memory_space<vmem>>, vector<1x24x1024xf32>
    %17 = vector.shape_cast %16 : vector<1x24x1024xf32> to vector<24x1024xf32>
    %18 = vector.shape_cast %15 : vector<24x1024xf32> to vector<1x24x1024xf32>
    tpu.vector_store %arg6[%c0_10, %c0_11, %c0_12], %18 {strides = array<i32>} : memref<1x24x1024xf32, #tpu.memory_space<vmem>>, vector<1x24x1024xf32>,
    return
  }
  func.func @transform_0(%arg0: i32, %arg1: i32) -> (i32, i32) {
    %c0_i32 = arith.constant 0 : i32
    %c0_i32_0 = arith.constant 0 : i32
    %c0_i32_1 = arith.constant 0 : i32
    return %c0_i32, %c0_i32_0 : i32, i32
  }
  func.func @transform_1(%arg0: i32, %arg1: i32) -> (i32, i32) {
    %c0_i32 = arith.constant 0 : i32
    %c0_i32_0 = arith.constant 0 : i32
    %c0_i32_1 = arith.constant 0 : i32
    return %c0_i32, %c0_i32_0 : i32, i32
  }
  func.func @transform_2(%arg0: i32, %arg1: i32) -> (i32, i32, i32) {
    %c0_i32 = arith.constant 0 : i32
    %c0_i32_0 = arith.constant 0 : i32
    return %arg0, %c0_i32, %arg1 : i32, i32, i32
  }
  func.func @transform_3(%arg0: i32, %arg1: i32) -> (i32, i32, i32) {
    %c0_i32 = arith.constant 0 : i32
    %c0_i32_0 = arith.constant 0 : i32
    return %arg0, %c0_i32, %arg1 : i32, i32, i32
  }
  func.func @transform_4(%arg0: i32, %arg1: i32) -> (i32, i32, i32) {
    %c0_i32 = arith.constant 0 : i32
    %c0_i32_0 = arith.constant 0 : i32
    return %arg0, %c0_i32, %arg1 : i32, i32, i32
  }
}

</mosaic_0001>

<bundles_post_ra>
// kernel: tpu_custom_call.1
= control target key start
LH: loop header
LB: loop body
LE: loop exit
PB: predicated region body
PF: predicated region fallthrough
CT: control target
= control target key end

     0   :  { %9 = vsyncpa [#allocation3], 0  ;;  %s1946_s0 = inlined_call_operand.vmem [shape: f32[24,24], index: 0, kind: input, shape index: {}]   ;;  %s1947_s1 = inlined_call_operand.vmem [shape: f32[24,1], index: 1, kind: input, shape index: {}]   ;;  %s1948_s2 = inlined_call_operand.hbm [shape: f32[2,24,1024], index: 2, kind: input, shape index: {}]   ;;  %s1949_s3 = inlined_call_operand.hbm [shape: f32[2,24,1024], index: 3, kind: input, shape index: {}]   ;;  %s1950_s4 = inlined_call_operand.hbm [shape: f32[2,24,1024], index: 4, kind: output, shape index: {}]  }
   0x1   :  { %11 = vsyncpa [#allocation3 + $0x1], 0 }
   0x2   :  { %12 = vsyncpa [#allocation6], 0 }
   0x3   :  { %14 = vsyncpa [#allocation6 + $0x1], 0 }
   0x4   :  { %15 = vsyncpa [#allocation4], 0 }
   0x5   :  { %17 = vsyncpa [#allocation4 + $0x1], 0  ;;  %s1458_s15 = smov 0   ;;  %s1460_s16 = smov 0  }
   0x6   :  { %s1462_s17 = smov 0   ;;  %s1464_s18 = smov 0  }
   0x7   :  { %s1466_s19 = smov 0   ;;  %s1468_s20 = smov 0  }
   0x8 LB: > { %s1037_s21 = sadd.s32 4294967295, %s1422_s20   ;;  %s1038_s22 = sadd.s32 4294967294, %s1422_s20   ;;  %s1422_s20 = sphi %s1468_s20, %s23_s20   ;;  %s1418_s19 = sphi %s1466_s19, %s1970_s19   ;;  %s1414_s18 = sphi %s1464_s18, %s1969_s18   ;;  %s1410_s17 = sphi %s1462_s17, %s1968_s17   ;;  %s1406_s16 = sphi %s1460_s16, %s1967_s16   ;;  %s1402_s15 = sphi %s1458_s15, %s1966_s15  }
   0x9   : > { %s35_s23 = sadd.s32 1, %s1418_s19  ;;  %s86_s24 = sadd.s32 1, %s1410_s17 }
   0xa   : > { %p37_p0 = scmp.ge.s32.totalorder %s35_s23, 2  ;;  %p93_p1 = scmp.ne.s32.totalorder %s1410_s17, %s1406_s16 }
   0xb   : > { %p94_p2 = scmp.eq.s32.totalorder %s1422_s20, 0  ;;  %p99_p3 = scmp.ne.s32.totalorder %s1406_s16, %s1402_s15 }
   0xc   : > { %s1972_s23 = smov (%p37_p0, %s35_s23), 0  ;;  %p100_p5 = scmp.eq.s32.totalorder %s1037_s21, 0 }
   0xd   : > { %p1499_p4 = por %p94_p2, %p93_p1  ;;  %s81_s26 = ssub.s32 %s1418_s19, %s1972_s23 }
   0xe   : > { %p153_p6 = scmp.eq.s32.totalorder %s1037_s21, 1  ;;  %p84_p7 = scmp.eq.s32.totalorder %s81_s26, 0 }
   0xf   : > { %p1505_p8 = por %p100_p5, %p99_p3  ;;  %p159_p10 = scmp.eq.s32.totalorder %s1038_s22, 1 }
  0x10   : > { %p1509_p9 = por %p153_p6, %p93_p1  ;;  %p1122_p13 = scmp.lt.s32.totalorder %s1422_s20, 2 }
  0x11   : > { %s1955_s27 = scalar_select %p1505_p8, 1, 0 }
  0x12   : > { %s1956_s28 = scalar_select %p1509_p9, 1, 0 }
  0x13   : > { %s1514_s29 = scalar_select %p84_p7, %s1410_s17, %s86_s24  }
  0x14   : > { %p1516_p11 = por %p159_p10, %p99_p3  ;;  %s1523_s5 = sand.u32 1, %s1410_s17  }
  0x15   : > { %s1099_s6 = smul.u32 192, %s1523_s5  ;;  %p1529_p0 = pnand %p1122_p13, %p1499_p4 }
  0x16   : > { %s1957_s30 = scalar_select %p1516_p11, 1, 0 }
  0x17   : > { %s1100_s7 = smul.u32 3072, %s1418_s19  ;;  %s189_s12 = scalar_lea.vmem [#allocation2], %s1099_s6 }
  0x18   : > { %s198_s13 = sshll.u32 %s189_s12, 4  ;;  %s186_s14 = scalar_lea.sflag [#allocation3], %s1523_s5  ;;  %s1542_s13 = int_to_ptr.vmem [resolvable:$true] %s198_s13 }
  0x19   : > { %s1538_s11 = scalar_lea.hbm %s1948_s2, %s1100_s7  ;;  %p1278_p3 = pneg %p1529_p0 }
  0x1a   : > { %s1276_s21 = scalar_lea.hbm %s1538_s11, 3072  ;;  %s1281_s25 = scalar_lea.hbm %s1948_s2, 6144 }
  0x1b   : > { %p1277_p2 = scmp.ne.s32.totalorder %s1538_s11, %s1276_s21  ;;  %p1282_p6 = scmp.lt.u32.totalorder %s1538_s11, %s1948_s2 }
  0x1c   : > { %p1283_p7 = scmp.lt.u32.totalorder %s1281_s25, %s1276_s21  ;;  %p1285_p13 = scmp.lt.u32.totalorder %s1276_s21, %s1538_s11 }
  0x1d   : > { %p1279_p4 = pnand %p1278_p3, %p1277_p2 }
  0x1e   : > { %p1284_p10 = por %p1283_p7, %p1282_p6 }
  0x1f   : > { %p1280_p5 = pneg %p1279_p4 }
  0x20   : > { %p1286_p12 = por %p1285_p13, %p1284_p10 }
  0x22   : > { %p1287_p1 = pnand %p1286_p12, %p1280_p5 }
  0x24   : > { %1290 = shalt.err (!%p1287_p1)
}
  0x25   : > { %s1291_s10 = scalar_lea.vmem %s1542_s13, 3072  ;;  %s1424_s12 = smov [#allocation2]  }
  0x26   : > { %p1292_p2 = scmp.ne.s32.totalorder %s1542_s13, %s1291_s10  ;;  %s1296_s22 = sshll.u32 %s1424_s12, 4  ;;  %s1297_s22 = int_to_ptr.vmem [resolvable:$false] %s1296_s22 }
  0x27   : > { %s1298_s24 = scalar_lea.vmem %s1297_s22, 6144  ;;  %p1299_p9 = scmp.lt.s32.totalorder %s1542_s13, %s1297_s22 }
  0x28   : > { %p1294_p4 = pnand %p1292_p2, %p1278_p3  ;;  %p1300_p6 = scmp.lt.s32.totalorder %s1298_s24, %s1291_s10 }
  0x2a   : > { %p1295_p11 = pneg %p1294_p4  ;;  %p1301_p7 = por %p1300_p6, %p1299_p9 }
  0x2c   : > { %p1302_p10 = pnand %p1301_p7, %p1295_p11 }
  0x2e   : > { %1305 = shalt.err (!%p1302_p10)
}
  0x2f   : > { %s1952_s21 = smov 1024   ;;  %s1426_s25 = smov 64  }
  0x30   : > { %1114 = dma.hbm_to_vmem [thread:$0]  (!%p1529_p0), %s1538_s11, 3072, %s1542_s13, %s186_s14, %s1952_s21, %s1952_s21, %s1426_s25  }
  0x31   : > { %p229_p9 = scmp.lt.s32.totalorder %s1422_s20, 3  ;;  %s1582_s10 = scalar_lea.hbm %s1949_s3, %s1100_s7 }
  0x32   : > { %p1959_p11 = scmp.ge.s32.totalorder %s1422_s20, 1  ;;  %s212_s22 = scalar_lea.vmem [#allocation5], %s1099_s6 }
  0x33   : > { %s221_s24 = sshll.u32 %s212_s22, 4  ;;  %s209_s11 = scalar_lea.sflag [#allocation6], %s1523_s5  ;;  %s1592_s24 = int_to_ptr.vmem [resolvable:$true] %s221_s24 }
  0x34   : > { %p1586_p12 = pnand %p1959_p11, %p229_p9  ;;  %s1306_s13 = scalar_lea.hbm %s1582_s10, 3072 }
  0x35   : > { %p1307_p1 = scmp.ne.s32.totalorder %s1582_s10, %s1306_s13  ;;  %s1311_s26 = scalar_lea.hbm %s1949_s3, 6144 }
  0x36   : > { %p1312_p2 = scmp.lt.u32.totalorder %s1582_s10, %s1949_s3  ;;  %p1313_p4 = scmp.lt.u32.totalorder %s1311_s26, %s1306_s13 }
  0x37   : > { %p1309_p5 = pnand %p1307_p1, %p1278_p3  ;;  %p1315_p7 = scmp.lt.u32.totalorder %s1306_s13, %s1582_s10 }
  0x38   : > { %p1314_p6 = por %p1313_p4, %p1312_p2 }
  0x39   : > { %p1310_p13 = pneg %p1309_p5 }
  0x3a   : > { %p1316_p10 = por %p1315_p7, %p1314_p6 }
  0x3c   : > { %p1317_p9 = pnand %p1316_p10, %p1310_p13 }
  0x3e   : > { %1320 = shalt.err (!%p1317_p9)
}
  0x3f   : > { %s1321_s6 = scalar_lea.vmem %s1592_s24, 3072  ;;  %s1427_s22 = smov [#allocation5]  }
  0x40   : > { %p1322_p11 = scmp.ne.s32.totalorder %s1592_s24, %s1321_s6  ;;  %s1326_s7 = sshll.u32 %s1427_s22, 4  ;;  %s1327_s7 = int_to_ptr.vmem [resolvable:$false] %s1326_s7 }
  0x41   : > { %s1328_s21 = scalar_lea.vmem %s1327_s7, 6144  ;;  %p1329_p8 = scmp.lt.s32.totalorder %s1592_s24, %s1327_s7 }
  0x42   : > { %p1324_p1 = pnand %p1322_p11, %p1278_p3  ;;  %p1330_p2 = scmp.lt.s32.totalorder %s1328_s21, %s1321_s6 }
  0x44   : > { %p1325_p5 = pneg %p1324_p1  ;;  %p1331_p4 = por %p1330_p2, %p1329_p8 }
  0x46   : > { %p1332_p6 = pnand %p1331_p4, %p1325_p5 }
  0x48   : > { %1335 = shalt.err (!%p1332_p6)
}
  0x49   : > { %s1961_s13 = smov 1024   ;;  %233 = sbr.rel (%p1586_p12) target bundleno = 388 (0x184), region = 36 }
  0x4a   : > { %1117 = dma.hbm_to_vmem [thread:$0]  (!%p1529_p0), %s1582_s10, 3072, %s1592_s24, %s209_s11, %s1961_s13, %s1961_s13, %s1426_s25  }
  0x4b   : > { %s1626_s14 = sand.u32 (!%p1586_p12), 1, %s1406_s16   ;;  %p1962_p8 = scmp.ne.s32.totalorder (!%p1586_p12), %s1955_s27, 0 }
  0x4c   : > { %s1629_s26 = smul.u32 (!%p1586_p12), 192, %s1626_s14  ;;  %s236_s8 = scalar_lea.sflag (!%p1586_p12), [#allocation3], %s1626_s14 }
  0x4e   : > { %s1633_s9 = scalar_lea.vmem (!%p1586_p12), [#allocation2], %s1629_s26 }
  0x50   : > { %1389 = dma.done.wait (%p1962_p8), %s236_s8, 3072  }
  0x51   : > { %1391 = vsyncadd (%p1962_p8), %s236_s8, 4294964224  ;;  %s245_s5 = scalar_lea.sflag [#allocation6], %s1626_s14  ;;  %s1641_s25 = scalar_lea.vmem [#allocation5], %s1629_s26 }
  0x52   : > { %1393 = dma.done.wait (%p1962_p8), %s245_s5, 3072  }
  0x53   : > { %1395 = vsyncadd (%p1962_p8), %s245_s5, 4294964224  ;;  %v1428_v0 = vmov 0.0   ;;  %v1429_v1 = vmov 0   ;;  %v285_v2 = vld [vmem:[%s1633_s9 + $0x8] sm:$0xff]  ;;  %v287_v4 = vld [vmem:[%s1633_s9 + $0x18] sm:$0xff]  ;;  %vm326_vm0 = vcmask 195584  }
  0x54   : > { %400 = vmatprep.mubr.f32.mxu0 %v1428_v0  ;;  %483 = vmatprep.mubr.f32.mxu1 %v1428_v0  ;;  %v293_v3 = vld [vmem:[%s1633_s9 + $0x48] sm:$0xff]  ;;  %v295_v6 = vld [vmem:[%s1633_s9 + $0x58] sm:$0xff]  ;;  %v284_v7 = vld [vmem:[%s1633_s9] sm:$0xff]  ;;  %s1829_s5 = scalar_lea.vmem [#allocation7], %s1629_s26  ;;  %s1104_s26 = smul.u32 3072, %s1414_s18 }
  0x55   : > { %1178 = vset.pattern.permute.xlu0 %v1429_v1  ;;  %1179 = vset.pattern.permute.xlu1 %v1429_v1  ;;  %v1083_v5 = vpack.c.bf16 %v293_v3, %v285_v2  ;;  %v292_v8 = vld [vmem:[%s1633_s9 + $0x40] sm:$0xff]  ;;  %v1087_v9 = vpack.c.bf16 %v295_v6, %v287_v4  ;;  %v286_v11 = vld [vmem:[%s1633_s9 + $0x10] sm:$0xff]  ;;  %v301_v13 = vld [vmem:[%s1633_s9 + $0x88] sm:$0xff]  ;;  %s909_s12 = scalar_lea.sflag [#allocation4], %s1626_s14  ;;  %p1963_p3 = scmp.ne.s32.totalorder %s1956_s28, 0 }
  0x56   : > { %v1085_v10 = vpack.c.bf16 %v292_v8, %v284_v7  ;;  %v294_v12 = vld [vmem:[%s1633_s9 + $0x50] sm:$0xff]  ;;  %v303_v15 = vld [vmem:[%s1633_s9 + $0x98] sm:$0xff]  ;;  %v300_v16 = vld [vmem:[%s1633_s9 + $0x80] sm:$0xff]  ;;  %s1891_s10 = scalar_lea.hbm %s1950_s4, %s1104_s26  ;;  %s1430_s11 = smov [#allocation7]  }
  0x57   : > { %1084 = vmatprep.subr.bf16.mxu0 %v1083_v5  ;;  %v1089_v14 = vpack.c.bf16 %v294_v12, %v286_v11  ;;  %1088 = vmatprep.subr.bf16.mxu1 %v1087_v9  ;;  %v302_v17 = vld [vmem:[%s1633_s9 + $0x90] sm:$0xff]  ;;  %v281_v18 = vld [vmem:[%s1946_s0] sm:$0xff]  ;;  %v289_v19 = vld [vmem:[%s1633_s9 + $0x28] sm:$0xff]  ;;  %s1340_s6 = sshll.u32 %s1430_s11, 4  ;;  %s1341_s6 = int_to_ptr.vmem [resolvable:$false] %s1340_s6 }
  0x58   : > { %1086 = vmatpush1.bf16.msra.mxu0 %v1085_v10  ;;  %v297_v20 = vld [vmem:[%s1633_s9 + $0x68] sm:$0xff]  ;;  %v291_v21 = vld [vmem:[%s1633_s9 + $0x38] sm:$0xff]  ;;  %v288_v23 = vld [vmem:[%s1633_s9 + $0x20] sm:$0xff]  ;;  %s1342_s22 = scalar_lea.vmem %s1341_s6, 6144 }
  0x59   : > { %1090 = vmatpush1.bf16.msra.mxu1 %v1089_v14  ;;  %340 = vmatprep.subr.mxu0 %v301_v13  ;;  %v299_v22 = vld [vmem:[%s1633_s9 + $0x78] sm:$0xff]  ;;  %v1091_v24 = vpack.c.bf16 %v297_v20, %v289_v19  ;;  %v296_v25 = vld [vmem:[%s1633_s9 + $0x60] sm:$0xff]  ;;  %v290_v26 = vld [vmem:[%s1633_s9 + $0x30] sm:$0xff] }
  0x5a   : > { %423 = vmatprep.subr.mxu1 %v303_v15  ;;  %v298_v27 = vld [vmem:[%s1633_s9 + $0x70] sm:$0xff]  ;;  %v1095_v28 = vpack.c.bf16 %v299_v22, %v291_v21  ;;  %v1093_v29 = vpack.c.bf16 %v296_v25, %v288_v23  ;;  %v282_v31 = vld [vmem:[%s1946_s0 + $0x8] sm:$0xff]  ;;  %v307_v33 = vld [vmem:[%s1633_s9 + $0xb8] sm:$0xff] }
  0x5b   : > { %v1097_v30 = vpack.c.bf16 %v298_v27, %v290_v26  ;;  %v305_v32 = vld [vmem:[%s1633_s9 + $0xa8] sm:$0xff]  ;;  %v304_v34 = vld [vmem:[%s1633_s9 + $0xa0] sm:$0xff]  ;;  %v306_v35 = vld [vmem:[%s1633_s9 + $0xb0] sm:$0xff] }
  0x5c   : > { %341 = vmatpush1.msra.mxu0 %v300_v16  ;;  %v283_v36 = vld [vmem:[%s1946_s0 + $0x10] sm:$0xff]  ;;  %v308_v37 = vld [vmem:[%s1947_s1] sm:$0xff]  ;;  %v309_v39 = vld [vmem:[%s1947_s1 + $0x8] sm:$0xff] }
  0x5d   : > { %424 = vmatpush1.msra.mxu1 %v302_v17  ;;  %1044 = vmatmul.mubr.msk.f32.vlgmr.msra.gmra.mrb[0].mxu0 %vm326_vm0, %v281_v18  ;;  %v310_v38 = vld [vmem:[%s1947_s1 + $0x10] sm:$0xff]  ;;  %v668_v42 = vld [vmem:[%s1641_s25] sm:$0xff]  ;;  %v669_v47 = vld [vmem:[%s1641_s25 + $0x8] sm:$0xff] }
  0x5e   : > { %1047 = vmatmul.mubr.msk.f32.vlgmr.msra.gmra.mrb[0].mxu1 %vm326_vm0, %v281_v18  ;;  %1092 = vmatprep.subr.bf16.mxu0 %v1091_v24  ;;  %v670_v45 = vld [vmem:[%s1641_s25 + $0x10] sm:$0xff]  ;;  %v671_v51 = vld [vmem:[%s1641_s25 + $0x18] sm:$0xff]  ;;  %v676_v58 = vld [vmem:[%s1641_s25 + $0x40] sm:$0xff] }
  0x5f   : > { %1096 = vmatprep.subr.bf16.mxu1 %v1095_v28  ;;  %1094 = vmatpush1.bf16.msra.mxu0 %v1093_v29  ;;  %v678_v63 = vld [vmem:[%s1641_s25 + $0x50] sm:$0xff]  ;;  %v677_v1 = vld [vmem:[%s1641_s25 + $0x48] sm:$0xff]  ;;  %v679_v7 = vld [vmem:[%s1641_s25 + $0x58] sm:$0xff] }
  0x60   : > { %1098 = vmatpush1.bf16.msra.mxu1 %v1097_v30  ;;  %406 = vmatprep.mubr.f32.mxu0 %v1428_v0  ;;  %v684_v15 = vld [vmem:[%s1641_s25 + $0x80] sm:$0xff]  ;;  %v686_v20 = vld [vmem:[%s1641_s25 + $0x90] sm:$0xff]  ;;  %v685_v25 = vld [vmem:[%s1641_s25 + $0x88] sm:$0xff] }
  0x61   : > { %489 = vmatprep.mubr.f32.mxu1 %v1428_v0  ;;  %1045 = vmatmul.mubr.msk.f32.gmra.mrb[2].mxu0 %vm326_vm0, %v282_v31  ;;  %v687_v30 = vld [vmem:[%s1641_s25 + $0x98] sm:$0xff] }
  0x62   : > { %1048 = vmatmul.mubr.msk.f32.gmra.mrb[2].mxu1 %vm326_vm0, %v282_v31  ;;  %506 = vmatprep.subr.mxu0 %v305_v32 }
  0x63   : > { %589 = vmatprep.subr.mxu1 %v307_v33  ;;  %412 = vmatprep.mubr.f32.mxu0 %v1428_v0 }
  0x64   : > { %495 = vmatprep.mubr.f32.mxu1 %v1428_v0  ;;  %507 = vmatpush1.msra.mxu0 %v304_v34  ;;  %v672_v34 = vld [vmem:[%s1641_s25 + $0x20] sm:$0xff] }
  0x65   : > { %590 = vmatpush1.msra.mxu1 %v306_v35  ;;  %1046 = vmatmul.mubr.msk.f32.gmra.mrb[4].mxu0 %vm326_vm0, %v283_v36 }
  0x66   : > { %1049 = vmatmul.mubr.msk.f32.gmra.mrb[4].mxu1 %vm326_vm0, %v283_v36  ;;  %566 = vmatprep.mubr.f32.mxu0 %v1428_v0 }
  0x67   : > { %649 = vmatprep.mubr.f32.mxu1 %v1428_v0  ;;  %313 = vperm.xlu0 %1178, %v308_v37  }
  0x68   : > { %323 = vperm.xlu1 %1179, %v310_v38  }
  0x69   : > { %1050 = vmatmul.mubr.msk.f32.vlgmr.msra.gmra.mrb[6].mxu0 %vm326_vm0, %v281_v18 }
  0x6a   : > { %1053 = vmatmul.mubr.msk.f32.vlgmr.msra.gmra.mrb[6].mxu1 %vm326_vm0, %v281_v18  ;;  %572 = vmatprep.mubr.f32.mxu0 %v1428_v0 }
  0x6b   : > { %655 = vmatprep.mubr.f32.mxu1 %v1428_v0  ;;  %318 = vperm.xlu0 %1178, %v309_v39  }
  0x6d   : > { %1051 = vmatmul.mubr.msk.f32.gmra.mrb[8].mxu0 %vm326_vm0, %v282_v31 }
  0x6e   : > { %1054 = vmatmul.mubr.msk.f32.gmra.mrb[8].mxu1 %vm326_vm0, %v282_v31  ;;  %578 = vmatprep.mubr.f32.mxu0 %v1428_v0 }
  0x6f   : > { %661 = vmatprep.mubr.f32.mxu1 %v1428_v0 }
  0x71   : > { %1052 = vmatmul.mubr.msk.f32.gmra.mrb[10].mxu0 %vm326_vm0, %v283_v36 }
  0x72   : > { %1055 = vmatmul.mubr.msk.f32.gmra.mrb[10].mxu1 %vm326_vm0, %v283_v36 }
  0xe6   : > { %v1713_v40 = vpop.permute.xlu0 %313 }
  0xe7   : > { %v1743_v8 = vpop.permute.xlu1 %323 }
  0xea   : > { %v1722_v52 = vpop.permute.xlu0 %318 }
 0x130   : > { %v402_v41 = vpop.f32.mrb[0].mxu0 }
 0x131   : > { %v403_v43 = vadd.f32 %v402_v41, %v1713_v40  ;;  %v485_v44 = vpop.f32.mrb[0].mxu1  ;;  %v404_v46 = vpop.f32.mrb[1].mxu0 }
 0x132   : > { %v486_v48 = vadd.f32 %v485_v44, %v1713_v40  ;;  %v405_v49 = vadd.f32 %v404_v46, %v1713_v40  ;;  %v487_v50 = vpop.f32.mrb[1].mxu1 }
 0x133   : > { %v1724_v53 = vadd.f32 %v668_v42, %v403_v43  ;;  %v488_v54 = vadd.f32 %v487_v50, %v1713_v40 }
 0x134   : > { %v1727_v55 = vadd.f32 %v670_v45, %v486_v48  ;;  %v1729_v56 = vadd.f32 %v669_v47, %v405_v49  ;;  %v408_v57 = vpop.f32.mrb[2].mxu0 }
 0x135   : > { %v1056_v59 = vmul.f32 -1.442695, %v1724_v53  ;;  %v1733_v60 = vadd.f32 %v671_v51, %v488_v54  ;;  %v409_v61 = vadd.f32 %v408_v57, %v1722_v52  ;;  %v491_v62 = vpop.f32.mrb[2].mxu1  ;;  %v410_v0 = vpop.f32.mrb[3].mxu0 }
 0x136   : > { %v1058_v2 = vmul.f32 -1.442695, %v1727_v55  ;;  %v1057_v3 = vmul.f32 -1.442695, %v1729_v56  ;;  %v492_v4 = vadd.f32 %v491_v62, %v1722_v52  ;;  %v411_v5 = vadd.f32 %v410_v0, %v1722_v52  ;;  %v493_v6 = vpop.f32.mrb[3].mxu1 }
 0x137   : > { %1180 = vpow2.f32 %v1056_v59  ;;  %v1059_v9 = vmul.f32 -1.442695, %v1733_v60  ;;  %v1746_v10 = vadd.f32 %v676_v58, %v409_v61  ;;  %v494_v11 = vadd.f32 %v493_v6, %v1722_v52  ;;  %v674_v59 = vld [vmem:[%s1641_s25 + $0x30] sm:$0xff] }
 0x138   : > { %1182 = vpow2.f32 %v1058_v2  ;;  %v1749_v12 = vadd.f32 %v678_v63, %v492_v4  ;;  %v1751_v13 = vadd.f32 %v677_v1, %v411_v5  ;;  %v414_v14 = vpop.f32.mrb[4].mxu0  ;;  %v673_v1 = vld [vmem:[%s1641_s25 + $0x28] sm:$0xff] }
 0x139   : > { %1184 = vpow2.f32 %v1057_v3  ;;  %v1064_v16 = vmul.f32 -1.442695, %v1746_v10  ;;  %v1755_v17 = vadd.f32 %v679_v7, %v494_v11  ;;  %v415_v18 = vadd.f32 %v414_v14, %v1743_v8  ;;  %v497_v19 = vpop.f32.mrb[4].mxu1  ;;  %v416_v21 = vpop.f32.mrb[5].mxu0  ;;  %v675_v11 = vld [vmem:[%s1641_s25 + $0x38] sm:$0xff] }
 0x13a   : > { %1186 = vpow2.f32 %v1059_v9  ;;  %v1066_v22 = vmul.f32 -1.442695, %v1749_v12  ;;  %v1065_v23 = vmul.f32 -1.442695, %v1751_v13  ;;  %v498_v24 = vadd.f32 %v497_v19, %v1743_v8  ;;  %v499_v26 = vpop.f32.mrb[5].mxu1 }
 0x13b   : > { %1188 = vpow2.f32 %v1064_v16  ;;  %v1067_v27 = vmul.f32 -1.442695, %v1755_v17  ;;  %v1764_v28 = vadd.f32 %v684_v15, %v415_v18  ;;  %v417_v29 = vadd.f32 %v416_v21, %v1743_v8 }
 0x13c   : > { %1190 = vpow2.f32 %v1066_v22  ;;  %v1768_v31 = vadd.f32 %v686_v20, %v498_v24  ;;  %v500_v32 = vadd.f32 %v499_v26, %v1743_v8  ;;  %v568_v33 = vpop.f32.mrb[6].mxu0  ;;  %v680_v26 = vld [vmem:[%s1641_s25 + $0x60] sm:$0xff] }
 0x13d   : > { %1192 = vpow2.f32 %v1065_v23  ;;  %v1072_v35 = vmul.f32 -1.442695, %v1764_v28  ;;  %v1773_v36 = vadd.f32 %v685_v25, %v417_v29  ;;  %v569_v37 = vadd.f32 %v568_v33, %v1713_v40  ;;  %v651_v38 = vpop.f32.mrb[6].mxu1  ;;  %v570_v39 = vpop.f32.mrb[7].mxu0 }
 0x13e   : > { %1194 = vpow2.f32 %v1067_v27  ;;  %v1074_v41 = vmul.f32 -1.442695, %v1768_v31  ;;  %v1777_v42 = vadd.f32 %v687_v30, %v500_v32  ;;  %v653_v43 = vpop.f32.mrb[7].mxu1  ;;  %v652_v50 = vadd.f32 %v651_v38, %v1713_v40 }
 0x13f   : > { %1196 = vpow2.f32 %v1072_v35  ;;  %v1073_v44 = vmul.f32 -1.442695, %v1773_v36  ;;  %v1780_v45 = vadd.f32 %v672_v34, %v569_v37  ;;  %v571_v61 = vadd.f32 %v570_v39, %v1713_v40  ;;  %v682_v37 = vld [vmem:[%s1641_s25 + $0x70] sm:$0xff] }
 0x140   : > { %1198 = vpow2.f32 %v1074_v41  ;;  %v1075_v46 = vmul.f32 -1.442695, %v1777_v42  ;;  %v574_v47 = vpop.f32.mrb[8].mxu0  ;;  %v654_v4 = vadd.f32 %v653_v43, %v1713_v40  ;;  %v1789_v9 = vadd.f32 %v674_v59, %v652_v50  ;;  %v683_v50 = vld [vmem:[%s1641_s25 + $0x78] sm:$0xff]  ;;  %v688_v59 = vld [vmem:[%s1641_s25 + $0xa0] sm:$0xff] }
 0x141   : > { %v1181_v48 = vpop.eup %1180  ;;  %1200 = vpow2.f32 %v1073_v44  ;;  %v1060_v49 = vmul.f32 -1.442695, %v1780_v45  ;;  %v657_v51 = vpop.f32.mrb[8].mxu1  ;;  %v1792_v19 = vadd.f32 %v673_v1, %v571_v61  ;;  %v575_v40 = vadd.f32 %v574_v47, %v1722_v52  ;;  %v681_v44 = vld [vmem:[%s1641_s25 + $0x68] sm:$0xff] }
 0x142   : > { %v576_v54 = vpop.f32.mrb[9].mxu0  ;;  %v1183_v57 = vpop.eup %1182  ;;  %v788_v58 = vadd.f32 1.0, %v1181_v48  ;;  %1202 = vpow2.f32 %v1075_v46  ;;  %v1795_v25 = vadd.f32 %v675_v11, %v654_v4  ;;  %v1062_v30 = vmul.f32 -1.442695, %v1789_v9 }
 0x143   : > { %v659_v62 = vpop.f32.mrb[9].mxu1  ;;  %v1185_v63 = vpop.eup %1184  ;;  %v790_v0 = vadd.f32 1.0, %v1183_v57  ;;  %1204 = vpow2.f32 %v1060_v49  ;;  %v658_v32 = vadd.f32 %v657_v51, %v1722_v52  ;;  %v1061_v35 = vmul.f32 -1.442695, %v1792_v19 }
 0x144   : > { %v1187_v2 = vpop.eup %1186  ;;  %1206 = vrcp.f32 %v788_v58  ;;  %v789_v3 = vadd.f32 1.0, %v1185_v63  ;;  %v580_v5 = vpop.f32.mrb[10].mxu0  ;;  %v577_v38 = vadd.f32 %v576_v54, %v1722_v52  ;;  %v1803_v43 = vadd.f32 %v680_v26, %v575_v40 }
 0x145   : > { %v1189_v6 = vpop.eup %1188  ;;  %1208 = vrcp.f32 %v790_v0  ;;  %v791_v7 = vadd.f32 1.0, %v1187_v2  ;;  %v663_v14 = vpop.f32.mrb[10].mxu1  ;;  %v660_v46 = vadd.f32 %v659_v62, %v1722_v52  ;;  %v1063_v49 = vmul.f32 -1.442695, %v1795_v25  ;;  %v690_v0 = vld [vmem:[%s1641_s25 + $0xb0] sm:$0xff] }
 0x146   : > { %v582_v15 = vpop.f32.mrb[11].mxu0  ;;  %v1191_v16 = vpop.eup %1190  ;;  %1210 = vrcp.f32 %v789_v3  ;;  %v796_v18 = vadd.f32 1.0, %v1189_v6  ;;  %v581_v51 = vadd.f32 %v580_v5, %v1743_v8  ;;  %v1810_v58 = vadd.f32 %v682_v37, %v658_v32  ;;  %v689_v5 = vld [vmem:[%s1641_s25 + $0xa8] sm:$0xff] }
 0x147   : > { %v665_v20 = vpop.f32.mrb[11].mxu1  ;;  %v1193_v21 = vpop.eup %1192  ;;  %1212 = vrcp.f32 %v791_v7  ;;  %v798_v22 = vadd.f32 1.0, %v1191_v16  ;;  %v664_v61 = vadd.f32 %v663_v14, %v1743_v8  ;;  %v1814_v62 = vadd.f32 %v681_v44, %v577_v38 }
 0x148   : > { %v1195_v23 = vpop.eup %1194  ;;  %1214 = vrcp.f32 %v796_v18  ;;  %v797_v24 = vadd.f32 1.0, %v1193_v21  ;;  %v583_v1 = vadd.f32 %v582_v15, %v1743_v8  ;;  %v1819_v4 = vadd.f32 %v683_v50, %v660_v46  ;;  %v691_v18 = vld [vmem:[%s1641_s25 + $0xb8] sm:$0xff]  ;;  %s924_s25 = sshll.u32 %s1829_s5, 4  ;;  %s1893_s25 = int_to_ptr.vmem [resolvable:$true] %s924_s25 }
 0x149   : > { %v1197_v27 = vpop.eup %1196  ;;  %1216 = vrcp.f32 %v798_v22  ;;  %v799_v29 = vadd.f32 1.0, %v1195_v23  ;;  %v666_v6 = vadd.f32 %v665_v20, %v1743_v8  ;;  %v1068_v14 = vmul.f32 -1.442695, %v1803_v43  ;;  %s1336_s24 = scalar_lea.vmem %s1893_s25, 3072  ;;  %p1343_p7 = scmp.lt.s32.totalorder %s1893_s25, %s1341_s6 }
 0x14a   : > { %v1199_v33 = vpop.eup %1198  ;;  %1218 = vrcp.f32 %v797_v24  ;;  %v804_v34 = vadd.f32 1.0, %v1197_v27  ;;  %v1825_v16 = vadd.f32 %v688_v59, %v581_v51  ;;  %v1070_v8 = vmul.f32 -1.442695, %v1810_v58  ;;  %p1337_p0 = scmp.ne.s32.totalorder %s1893_s25, %s1336_s24  ;;  %p1344_p10 = scmp.lt.s32.totalorder %s1342_s22, %s1336_s24 }
 0x14b   : > { %v1201_v39 = vpop.eup %1200  ;;  %1220 = vrcp.f32 %v799_v29  ;;  %v806_v41 = vadd.f32 1.0, %v1199_v33  ;;  %v1069_v22 = vmul.f32 -1.442695, %v1814_v62  ;;  %v1839_v40 = vadd.f32 %v689_v5, %v583_v1 }
 0x14c   : > { %v1203_v47 = vpop.eup %1202  ;;  %1222 = vrcp.f32 %v804_v34  ;;  %v805_v48 = vadd.f32 1.0, %v1201_v39  ;;  %v1071_v24 = vmul.f32 -1.442695, %v1819_v4  ;;  %v1844_v26 = vadd.f32 %v691_v18, %v666_v6  ;;  %p1338_p12 = pnand %p1337_p0, %p1963_p3  ;;  %p1345_p9 = por %p1344_p10, %p1343_p7 }
 0x14d   : > { %v1205_v57 = vpop.eup %1204  ;;  %1224 = vrcp.f32 %v806_v41  ;;  %v807_v54 = vadd.f32 1.0, %v1203_v47  ;;  %v1076_v29 = vmul.f32 -1.442695, %v1825_v16 }
 0x14e   : > { %v1207_v63 = vpop.eup %1206  ;;  %1226 = vrcp.f32 %v805_v48  ;;  %v792_v52 = vadd.f32 1.0, %v1205_v57  ;;  %p1339_p13 = pneg %p1338_p12 }
 0x14f   : > { %v1209_v2 = vpop.eup %1208  ;;  %v860_v3 = vmul.f32 %v1207_v63, %v1724_v53  ;;  %1228 = vrcp.f32 %v807_v54 }
 0x150   : > { %v1211_v7 = vpop.eup %1210  ;;  %v862_v11 = vmul.f32 %v1209_v2, %v1727_v55  ;;  %1230 = vrcp.f32 %v792_v52  ;;  %v1834_v55 = vadd.f32 %v690_v0, %v664_v61  ;;  %p1346_p11 = pnand %p1345_p9, %p1339_p13 }
 0x151   : > { %v1213_v21 = vpop.eup %1212  ;;  %884 = vst [vmem:[%s1829_s5] sm:$0xff] %v860_v3  ;;  %v861_v53 = vmul.f32 %v1211_v7, %v1729_v56  ;;  %1232 = vpow2.f32 %v1062_v30 }
 0x152   : > { %v1215_v15 = vpop.eup %1214  ;;  %886 = vst [vmem:[%s1829_s5 + $0x10] sm:$0xff] %v862_v11  ;;  %v863_v20 = vmul.f32 %v1213_v21, %v1733_v60  ;;  %1234 = vpow2.f32 %v1061_v35 }
 0x153   : > { %v1217_v23 = vpop.eup %1216  ;;  %885 = vst [vmem:[%s1829_s5 + $0x8] sm:$0xff] %v861_v53  ;;  %v868_v56 = vmul.f32 %v1215_v15, %v1746_v10  ;;  %1236 = vpow2.f32 %v1063_v49  ;;  %v1078_v10 = vmul.f32 -1.442695, %v1834_v55 }
 0x154   : > { %v1219_v27 = vpop.eup %1218  ;;  %887 = vst [vmem:[%s1829_s5 + $0x18] sm:$0xff] %v863_v20  ;;  %v870_v60 = vmul.f32 %v1217_v23, %v1749_v12  ;;  %1238 = vpow2.f32 %v1068_v14  ;;  %v1077_v12 = vmul.f32 -1.442695, %v1839_v40 }
 0x155   : > { %v1221_v30 = vpop.eup %1220  ;;  %892 = vst [vmem:[%s1829_s5 + $0x40] sm:$0xff] %v868_v56  ;;  %v869_v32 = vmul.f32 %v1219_v27, %v1751_v13  ;;  %1240 = vpow2.f32 %v1070_v8  ;;  %v1079_v13 = vmul.f32 -1.442695, %v1844_v26 }
 0x156   : > { %v1223_v33 = vpop.eup %1222  ;;  %894 = vst [vmem:[%s1829_s5 + $0x50] sm:$0xff] %v870_v60  ;;  %v871_v34 = vmul.f32 %v1221_v30, %v1755_v17  ;;  %1242 = vpow2.f32 %v1069_v22 }
 0x157   : > { %v1225_v35 = vpop.eup %1224  ;;  %893 = vst [vmem:[%s1829_s5 + $0x48] sm:$0xff] %v869_v32  ;;  %v876_v37 = vmul.f32 %v1223_v33, %v1764_v28  ;;  %1244 = vpow2.f32 %v1071_v24 }
 0x158   : > { %v1227_v38 = vpop.eup %1226  ;;  %895 = vst [vmem:[%s1829_s5 + $0x58] sm:$0xff] %v871_v34  ;;  %v878_v39 = vmul.f32 %v1225_v35, %v1768_v31  ;;  %1246 = vpow2.f32 %v1076_v29 }
 0x159   : > { %v1229_v41 = vpop.eup %1228  ;;  %900 = vst [vmem:[%s1829_s5 + $0x80] sm:$0xff] %v876_v37  ;;  %v877_v17 = vmul.f32 %v1227_v38, %v1773_v36  ;;  %1248 = vpow2.f32 %v1078_v10 }
 0x15a   : > { %v1231_v44 = vpop.eup %1230  ;;  %902 = vst [vmem:[%s1829_s5 + $0x90] sm:$0xff] %v878_v39  ;;  %v879_v28 = vmul.f32 %v1229_v41, %v1777_v42  ;;  %1250 = vpow2.f32 %v1077_v12 }
 0x15b   : > { %v1233_v46 = vpop.eup %1232  ;;  %901 = vst [vmem:[%s1829_s5 + $0x88] sm:$0xff] %v877_v17  ;;  %v864_v47 = vmul.f32 %v1231_v44, %v1780_v45  ;;  %1252 = vpow2.f32 %v1079_v13 }
 0x15c   : > { %v1235_v48 = vpop.eup %1234  ;;  %903 = vst [vmem:[%s1829_s5 + $0x98] sm:$0xff] %v879_v28  ;;  %v794_v31 = vadd.f32 1.0, %v1233_v46 }
 0x15d   : > { %v1237_v49 = vpop.eup %1236  ;;  %888 = vst [vmem:[%s1829_s5 + $0x20] sm:$0xff] %v864_v47  ;;  %v793_v50 = vadd.f32 1.0, %v1235_v48 }
 0x15e   : > { %v1239_v51 = vpop.eup %1238  ;;  %1254 = vrcp.f32 %v794_v31  ;;  %v795_v36 = vadd.f32 1.0, %v1237_v49 }
 0x15f   : > { %v1241_v57 = vpop.eup %1240  ;;  %1256 = vrcp.f32 %v793_v50  ;;  %v800_v54 = vadd.f32 1.0, %v1239_v51 }
 0x160   : > { %v1243_v59 = vpop.eup %1242  ;;  %1258 = vrcp.f32 %v795_v36  ;;  %v802_v42 = vadd.f32 1.0, %v1241_v57 }
 0x161   : > { %v1245_v61 = vpop.eup %1244  ;;  %1260 = vrcp.f32 %v800_v54  ;;  %v801_v63 = vadd.f32 1.0, %v1243_v59 }
 0x162   : > { %v1247_v45 = vpop.eup %1246  ;;  %1262 = vrcp.f32 %v802_v42  ;;  %v803_v52 = vadd.f32 1.0, %v1245_v61 }
 0x163   : > { %v1249_v0 = vpop.eup %1248  ;;  %1264 = vrcp.f32 %v801_v63  ;;  %v808_v1 = vadd.f32 1.0, %v1247_v45 }
 0x164   : > { %v1251_v2 = vpop.eup %1250  ;;  %1266 = vrcp.f32 %v803_v52  ;;  %v810_v3 = vadd.f32 1.0, %v1249_v0 }
 0x165   : > { %v1253_v5 = vpop.eup %1252  ;;  %1268 = vrcp.f32 %v808_v1  ;;  %v809_v6 = vadd.f32 1.0, %v1251_v2 }
 0x166   : > { %1270 = vrcp.f32 %v810_v3  ;;  %v811_v7 = vadd.f32 1.0, %v1253_v5 }
 0x167   : > { %1272 = vrcp.f32 %v809_v6 }
 0x168   : > { %v1255_v11 = vpop.eup %1254  ;;  %1274 = vrcp.f32 %v811_v7 }
 0x169   : > { %v1257_v14 = vpop.eup %1256  ;;  %v866_v18 = vmul.f32 %v1255_v11, %v1789_v9 }
 0x16a   : > { %v1259_v21 = vpop.eup %1258  ;;  %v865_v53 = vmul.f32 %v1257_v14, %v1792_v19 }
 0x16b   : > { %v1261_v8 = vpop.eup %1260  ;;  %890 = vst [vmem:[%s1829_s5 + $0x30] sm:$0xff] %v866_v18  ;;  %v867_v15 = vmul.f32 %v1259_v21, %v1795_v25 }
 0x16c   : > { %v1263_v20 = vpop.eup %1262  ;;  %889 = vst [vmem:[%s1829_s5 + $0x28] sm:$0xff] %v865_v53  ;;  %v872_v22 = vmul.f32 %v1261_v8, %v1803_v43 }
 0x16d   : > { %v1265_v23 = vpop.eup %1264  ;;  %891 = vst [vmem:[%s1829_s5 + $0x38] sm:$0xff] %v867_v15  ;;  %v874_v56 = vmul.f32 %v1263_v20, %v1810_v58 }
 0x16e   : > { %v1267_v9 = vpop.eup %1266  ;;  %896 = vst [vmem:[%s1829_s5 + $0x60] sm:$0xff] %v872_v22  ;;  %v873_v19 = vmul.f32 %v1265_v23, %v1814_v62 }
 0x16f   : > { %v1269_v24 = vpop.eup %1268  ;;  %898 = vst [vmem:[%s1829_s5 + $0x70] sm:$0xff] %v874_v56  ;;  %v875_v25 = vmul.f32 %v1267_v9, %v1819_v4 }
 0x170   : > { %v1271_v43 = vpop.eup %1270  ;;  %897 = vst [vmem:[%s1829_s5 + $0x68] sm:$0xff] %v873_v19  ;;  %v880_v27 = vmul.f32 %v1269_v24, %v1825_v16 }
 0x171   : > { %v1273_v58 = vpop.eup %1272  ;;  %899 = vst [vmem:[%s1829_s5 + $0x78] sm:$0xff] %v875_v25  ;;  %v882_v60 = vmul.f32 %v1271_v43, %v1834_v55 }
 0x172   : > { %v1275_v62 = vpop.eup %1274  ;;  %904 = vst [vmem:[%s1829_s5 + $0xa0] sm:$0xff] %v880_v27  ;;  %v881_v29 = vmul.f32 %v1273_v58, %v1839_v40 }
 0x173   : > { %906 = vst [vmem:[%s1829_s5 + $0xb0] sm:$0xff] %v882_v60  ;;  %v883_v4 = vmul.f32 %v1275_v62, %v1844_v26 }
 0x174   : > { %905 = vst [vmem:[%s1829_s5 + $0xa8] sm:$0xff] %v881_v29 }
 0x175   : > { %907 = vst [vmem:[%s1829_s5 + $0xb8] sm:$0xff] %v883_v4 }
 0x176   : > { %1349 = shalt.err (!%p1346_p11)
}
 0x177   : > { %s1350_s7 = scalar_lea.hbm %s1891_s10, 3072  ;;  %s1354_s8 = scalar_lea.hbm %s1950_s4, 6144 }
 0x178   : > { %p1351_p1 = scmp.ne.s32.totalorder %s1891_s10, %s1350_s7  ;;  %p1355_p4 = scmp.lt.u32.totalorder %s1891_s10, %s1950_s4 }
 0x179   : > { %p1356_p6 = scmp.lt.u32.totalorder %s1354_s8, %s1350_s7  ;;  %p1358_p0 = scmp.lt.u32.totalorder %s1350_s7, %s1891_s10 }
 0x17a   : > { %p1352_p5 = pnand %p1351_p1, %p1963_p3 }
 0x17b   : > { %p1357_p8 = por %p1356_p6, %p1355_p4 }
 0x17c   : > { %p1353_p2 = pneg %p1352_p5 }
 0x17d   : > { %p1359_p12 = por %p1358_p0, %p1357_p8 }
 0x17f   : > { %p1360_p13 = pnand %p1359_p12, %p1353_p2 }
 0x181   : > { %1363 = shalt.err (!%p1360_p13)
}
 0x182   : > { %s1431_s26 = smov 1024   ;;  %s1432_s18 = smov 64  }
 0x183   : > { %1109 = dma.vmem_to_hbm [thread:$0]  (%p1963_p3), %s1893_s25, 3072, %s1891_s10, %s909_s12, %s1431_s26, %s1431_s26, %s1432_s18  }
 0x184 PF: > { %s939_s27 = sand.u32 1, %s1402_s15   ;;  %p1964_p7 = scmp.ne.s32.totalorder %s1957_s30, 0 }
 0x185   : > { %p1965_p10 = scmp.ge.s32.totalorder %s1422_s20, 2  ;;  %s940_s24 = scalar_lea.sflag [#allocation4], %s939_s27 }
 0x187   : > { %p1119_p9 = pnand %p1965_p10, %p1964_p7 }
 0x189   : > { %1397 = dma.done.wait (!%p1119_p9), %s940_s24, 3072  }
 0x18a   : > { %1399 = vsyncadd (!%p1119_p9), %s940_s24, 4294964224  ;;  %s23_s20 = sadd.s32 1, %s1422_s20   ;;  %s1966_s15 = smov %s1406_s16 }
 0x18b   : > { %p20_p11 = scmp.ge.s32.totalorder %s23_s20, 4   ;;  %s1967_s16 = smov %s1410_s17 }
 0x18c   : > { %s1968_s17 = smov %s1514_s29  ;;  %s1969_s18 = smov %s1418_s19 }
 0x18d   : > { %s1970_s19 = smov %s1972_s23  ;;  %22 = sbr.rel (!%p20_p11) target bundleno = 8 (0x8), region = 94 }
 0x194   :  { %945 = vsyncpa [#allocation3], 1 }
 0x195   :  { %947 = vsyncpa [#allocation3 + $0x1], 1 }
 0x196   :  { %948 = vsyncpa [#allocation6], 1 }
 0x197   :  { %950 = vsyncpa [#allocation6 + $0x1], 1 }
 0x198   :  { %951 = vsyncpa [#allocation4], 1 }
 0x199   :  { %953 = vsyncpa [#allocation4 + $0x1], 1 }

</bundles_post_ra>
